<compile_context>
chip_gen: v6e
topology: v6e:2x2x1
jax: 0.10.0
libtpu: 0.0.40
codegen_flags: <defaults>
</compile_context>

<pallas_src>
import functools

import jax
import jax.numpy as jnp
from jax.experimental import pallas as pl
from jax.experimental.pallas import tpu as pltpu


def gru_fused_kernel(x_ref, wi_ref, wh_ref, bi_ref, bhn_ref, wfc_ref, bfc_ref,
                     out_ref, *, T, B, H):
    """Entire forward pass in one kernel invocation (no grid).

    x_ref   : (T*B, E)  seq-major flattened embeddings
    wi_ref  : (E, 3H)   fused input->hidden weights, gate order [r | z | n]
    wh_ref  : (H, 3H)   fused hidden->hidden weights, gate order [r | z | n]
    bi_ref  : (1, 3H)   [b_ir+b_hr | b_iz+b_hz | b_in]
    bhn_ref : (1, H)    b_hn (must stay inside r * (...), PyTorch semantics)
    wfc_ref : (1, H)    fc weight (transposed) for VPU dot
    bfc_ref : (1, 1)    fc bias
    out_ref : (B, 1)    sigmoid(fc(h_T))
    """
    # Non-recurrent input projection for ALL timesteps at once:
    # one (T*B, E) x (E, 3H) matmul instead of 3*T tiny ones in the serial loop.
    gi_all = jnp.dot(x_ref[...], wi_ref[...],
                     preferred_element_type=jnp.float32) + bi_ref[...]

    # Hoisted loads: read once, reused every timestep.
    wh = wh_ref[...]
    bhn = bhn_ref[...]

    # Hidden state carried as a value (vregs), not through a scratch ref.
    h = jnp.zeros((B, H), jnp.float32)
    for t in range(T):  # static unroll: T is small & fixed at trace time
        gi = gi_all[t * B:(t + 1) * B, :]                         # (B, 3H)
        gh = jnp.dot(h, wh, preferred_element_type=jnp.float32)   # (B, 3H)
        # PyTorch GRU gate equations (gate order r, z, n)
        r = jax.nn.sigmoid(gi[:, 0:H] + gh[:, 0:H])
        z = jax.nn.sigmoid(gi[:, H:2 * H] + gh[:, H:2 * H])
        n = jnp.tanh(gi[:, 2 * H:3 * H] + r * (gh[:, 2 * H:3 * H] + bhn))
        h = (1.0 - z) * n + z * h

    # fc + sigmoid on the final hidden state.  N=1 MXU matmul replaced with a
    # VPU multiply + lane reduction (XLU); runs once.
    logits = jnp.sum(h * wfc_ref[...], axis=-1, keepdims=True) + bfc_ref[...]
    out_ref[...] = jax.nn.sigmoid(logits)


@jax.jit
def char_gru_forward(tokens, params):
    # Glue: embedding gather + seq-major flatten (B,T,E) -> (T*B, E).
    # TODO(synk): for large T/B, gather embeddings inside the kernel via
    # PrefetchScalarGridSpec scalar-prefetched token ids instead of
    # materializing emb in HBM here.
    emb = params["embedding"][tokens]                   # (B, T, E) fp32
    B, T, E = emb.shape
    H = params["wh"].shape[0]
    x = jnp.transpose(emb, (1, 0, 2)).reshape(T * B, E)  # seq-major flat

    vmem = pl.BlockSpec(memory_space=pltpu.MemorySpace.VMEM)
    kernel = functools.partial(gru_fused_kernel, T=T, B=B, H=H)

    out = pl.pallas_call(
        kernel,
        out_shape=jax.ShapeDtypeStruct((B, 1), jnp.float32),
        in_specs=[vmem] * 7,
        out_specs=vmem,
    )(x, params["wi"], params["wh"], params["bi"], params["bhn"],
      params["wfc"], params["bfc"])
    return out


def reference_forward(tokens, params):
    """Pure-JAX reference matching nn.GRU(batch_first=True) semantics."""
    emb = params["embedding"][tokens]
    B, T, _ = emb.shape
    H = params["wh"].shape[0]
    wi, wh, bi, bhn = params["wi"], params["wh"], params["bi"], params["bhn"]
    h = jnp.zeros((B, H), jnp.float32)
    for t in range(T):
        x_t = emb[:, t, :]
        gi = x_t @ wi + bi
        gh = h @ wh
        r = jax.nn.sigmoid(gi[:, 0:H] + gh[:, 0:H])
        z = jax.nn.sigmoid(gi[:, H:2 * H] + gh[:, H:2 * H])
        n = jnp.tanh(gi[:, 2 * H:] + r * (gh[:, 2 * H:] + bhn))
        h = (1.0 - z) * n + z * h
    logits = jnp.sum(h * params["wfc"], axis=-1, keepdims=True) + params["bfc"]
    return jax.nn.sigmoid(logits)


def init_params(key, vocab_size, hidden_size, embedding_dim):
    """Deterministic synthetic parameters (fused layout, PyTorch semantics)."""
    ks = jax.random.split(key, 16)
    H, E = hidden_size, embedding_dim
    k = 1.0 / jnp.sqrt(hidden_size)
    u = lambda kk, shape: jax.random.uniform(kk, shape, jnp.float32, -k, k)

    # per-gate weights (PyTorch layout transposed to (in, out)), gates r, z, n
    wir, wiz, win = u(ks[1], (E, H)), u(ks[2], (E, H)), u(ks[3], (E, H))
    whr, whz, whn = u(ks[4], (H, H)), u(ks[5], (H, H)), u(ks[6], (H, H))
    bir, bhr = u(ks[7], (1, H)), u(ks[8], (1, H))
    biz, bhz = u(ks[9], (1, H)), u(ks[10], (1, H))
    bin_, bhn = u(ks[11], (1, H)), u(ks[12], (1, H))

    params = {
        "embedding": jax.random.normal(ks[0], (vocab_size, E), jnp.float32),
        # fused gate weights, gate order [r | z | n]
        "wi": jnp.concatenate([wir, wiz, win], axis=1),   # (E, 3H)
        "wh": jnp.concatenate([whr, whz, whn], axis=1),   # (H, 3H)
        # fused bias: b_ir+b_hr and b_iz+b_hz can be pre-combined;
        # b_in stays in the fused vector, b_hn must stay separate
        # (it sits inside r * (...)).
        "bi": jnp.concatenate([bir + bhr, biz + bhz, bin_], axis=1),  # (1, 3H)
        "bhn": bhn,                                       # (1, H)
        # fc: Linear(hidden_size, 1), weight kept transposed as (1, H)
        "wfc": u(ks[13], (1, H)),
        "bfc": u(ks[14], (1, 1)),
    }
    return params


if __name__ == "__main__":
    vocab_size, hidden_size, embedding_dim = 50, 32, 16
    batch, seq_len = 2, 8

    key = jax.random.PRNGKey(0)
    pkey, tkey = jax.random.split(key)
    params = init_params(pkey, vocab_size, hidden_size, embedding_dim)
    tokens = jax.random.randint(tkey, (batch, seq_len), 0, vocab_size,
                                dtype=jnp.int32)

    out = char_gru_forward(tokens, params)
    out = jax.block_until_ready(out)

    ref = reference_forward(tokens, params)
    assert out.shape == (batch, 1)
    assert jnp.allclose(out, ref, atol=2e-5, rtol=1e-5), (out, ref)

    print("KERNEL_OK")
</pallas_src>

<mosaic_0001>
module attributes {stable_mosaic.version = 11 : i64} {
  func.func @gru_fused_kernel(%arg0: memref<16x16xf32, #tpu.memory_space<vmem>>, %arg1: memref<16x96xf32, #tpu.memory_space<vmem>>, %arg2: memref<32x96xf32, #tpu.memory_space<vmem>>, %arg3: memref<1x96xf32, #tpu.memory_space<vmem>>, %arg4: memref<1x32xf32, #tpu.memory_space<vmem>>, %arg5: memref<1x32xf32, #tpu.memory_space<vmem>>, %arg6: memref<1x1xf32, #tpu.memory_space<vmem>>, %arg7: memref<2x1xf32, #tpu.memory_space<vmem>>) attributes {dimension_semantics = [], scalar_prefetch = 0 : i64, scratch_operands = 0 : i64, tpu.core_type = #tpu.core_type<tc>} {
    %c0 = arith.constant 0 : index
    %c0_0 = arith.constant 0 : index
    %0 = vector.load %arg0[%c0, %c0_0] : memref<16x16xf32, #tpu.memory_space<vmem>>, vector<16x16xf32>
    %c0_1 = arith.constant 0 : index
    %c0_2 = arith.constant 0 : index
    %1 = vector.load %arg1[%c0_1, %c0_2] : memref<16x96xf32, #tpu.memory_space<vmem>>, vector<16x96xf32>
    %cst = arith.constant dense<0.000000e+00> : vector<16x96xf32>
    %2 = tpu.matmul %0, %1, %cst {dimension_numbers = #tpu.dot_dimension_numbers<[1], [0], [0], [1], [0, 0, 1, 1], [], []>} : vector<16x16xf32>, vector<16x96xf32>, vector<16x96xf32> -> vector<16x96xf32>
    %c0_3 = arith.constant 0 : index
    %c0_4 = arith.constant 0 : index
    %3 = vector.load %arg3[%c0_3, %c0_4] : memref<1x96xf32, #tpu.memory_space<vmem>>, vector<1x96xf32>
    %4 = vector.broadcast %3 : vector<1x96xf32> to vector<16x96xf32>
    %5 = arith.addf %2, %4 : vector<16x96xf32>
    %c0_5 = arith.constant 0 : index
    %c0_6 = arith.constant 0 : index
    %6 = vector.load %arg2[%c0_5, %c0_6] : memref<32x96xf32, #tpu.memory_space<vmem>>, vector<32x96xf32>
    %c0_7 = arith.constant 0 : index
    %c0_8 = arith.constant 0 : index
    %7 = vector.load %arg4[%c0_7, %c0_8] : memref<1x32xf32, #tpu.memory_space<vmem>>, vector<1x32xf32>
    %cst_9 = arith.constant 0.000000e+00 : f32
    %8 = vector.broadcast %cst_9 : f32 to vector<2x32xf32>
    %9 = vector.extract_strided_slice %5 {offsets = [0, 0], sizes = [2, 96], strides = [1, 1]} : vector<16x96xf32> to vector<2x96xf32>
    %cst_10 = arith.constant dense<0.000000e+00> : vector<2x96xf32>
    %10 = tpu.matmul %8, %6, %cst_10 {dimension_numbers = #tpu.dot_dimension_numbers<[1], [0], [0], [1], [0, 0, 1, 1], [], []>} : vector<2x32xf32>, vector<32x96xf32>, vector<2x96xf32> -> vector<2x96xf32>
    %11 = vector.extract_strided_slice %9 {offsets = [0, 0], sizes = [2, 32], strides = [1, 1]} : vector<2x96xf32> to vector<2x32xf32>
    %12 = vector.extract_strided_slice %10 {offsets = [0, 0], sizes = [2, 32], strides = [1, 1]} : vector<2x96xf32> to vector<2x32xf32>
    %13 = arith.addf %11, %12 : vector<2x32xf32>
    %14 = arith.negf %13 : vector<2x32xf32>
    %15 = math.exp %14 : vector<2x32xf32>
    %cst_11 = arith.constant 1.000000e+00 : f32
    %16 = vector.broadcast %cst_11 : f32 to vector<2x32xf32>
    %17 = arith.addf %16, %15 : vector<2x32xf32>
    %18 = arith.divf %16, %17 : vector<2x32xf32>
    %19 = vector.extract_strided_slice %9 {offsets = [0, 32], sizes = [2, 32], strides = [1, 1]} : vector<2x96xf32> to vector<2x32xf32>
    %20 = vector.extract_strided_slice %10 {offsets = [0, 32], sizes = [2, 32], strides = [1, 1]} : vector<2x96xf32> to vector<2x32xf32>
    %21 = arith.addf %19, %20 : vector<2x32xf32>
    %22 = arith.negf %21 : vector<2x32xf32>
    %23 = math.exp %22 : vector<2x32xf32>
    %cst_12 = arith.constant 1.000000e+00 : f32
    %24 = vector.broadcast %cst_12 : f32 to vector<2x32xf32>
    %25 = arith.addf %24, %23 : vector<2x32xf32>
    %26 = arith.divf %24, %25 : vector<2x32xf32>
    %27 = vector.extract_strided_slice %9 {offsets = [0, 64], sizes = [2, 32], strides = [1, 1]} : vector<2x96xf32> to vector<2x32xf32>
    %28 = vector.extract_strided_slice %10 {offsets = [0, 64], sizes = [2, 32], strides = [1, 1]} : vector<2x96xf32> to vector<2x32xf32>
    %29 = vector.broadcast %7 : vector<1x32xf32> to vector<2x32xf32>
    %30 = arith.addf %28, %29 : vector<2x32xf32>
    %31 = arith.mulf %18, %30 : vector<2x32xf32>
    %32 = arith.addf %27, %31 : vector<2x32xf32>
    %33 = math.tanh %32 : vector<2x32xf32>
    %cst_13 = arith.constant 1.000000e+00 : f32
    %34 = vector.broadcast %cst_13 : f32 to vector<2x32xf32>
    %35 = arith.subf %34, %26 : vector<2x32xf32>
    %36 = arith.mulf %35, %33 : vector<2x32xf32>
    %37 = arith.mulf %26, %8 : vector<2x32xf32>
    %38 = arith.addf %36, %37 : vector<2x32xf32>
    %39 = vector.extract_strided_slice %5 {offsets = [2, 0], sizes = [2, 96], strides = [1, 1]} : vector<16x96xf32> to vector<2x96xf32>
    %cst_14 = arith.constant dense<0.000000e+00> : vector<2x96xf32>
    %40 = tpu.matmul %38, %6, %cst_14 {dimension_numbers = #tpu.dot_dimension_numbers<[1], [0], [0], [1], [0, 0, 1, 1], [], []>} : vector<2x32xf32>, vector<32x96xf32>, vector<2x96xf32> -> vector<2x96xf32>
    %41 = vector.extract_strided_slice %39 {offsets = [0, 0], sizes = [2, 32], strides = [1, 1]} : vector<2x96xf32> to vector<2x32xf32>
    %42 = vector.extract_strided_slice %40 {offsets = [0, 0], sizes = [2, 32], strides = [1, 1]} : vector<2x96xf32> to vector<2x32xf32>
    %43 = arith.addf %41, %42 : vector<2x32xf32>
    %44 = arith.negf %43 : vector<2x32xf32>
    %45 = math.exp %44 : vector<2x32xf32>
    %cst_15 = arith.constant 1.000000e+00 : f32
    %46 = vector.broadcast %cst_15 : f32 to vector<2x32xf32>
    %47 = arith.addf %46, %45 : vector<2x32xf32>
    %48 = arith.divf %46, %47 : vector<2x32xf32>
    %49 = vector.extract_strided_slice %39 {offsets = [0, 32], sizes = [2, 32], strides = [1, 1]} : vector<2x96xf32> to vector<2x32xf32>
    %50 = vector.extract_strided_slice %40 {offsets = [0, 32], sizes = [2, 32], strides = [1, 1]} : vector<2x96xf32> to vector<2x32xf32>
    %51 = arith.addf %49, %50 : vector<2x32xf32>
    %52 = arith.negf %51 : vector<2x32xf32>
    %53 = math.exp %52 : vector<2x32xf32>
    %cst_16 = arith.constant 1.000000e+00 : f32
    %54 = vector.broadcast %cst_16 : f32 to vector<2x32xf32>
    %55 = arith.addf %54, %53 : vector<2x32xf32>
    %56 = arith.divf %54, %55 : vector<2x32xf32>
    %57 = vector.extract_strided_slice %39 {offsets = [0, 64], sizes = [2, 32], strides = [1, 1]} : vector<2x96xf32> to vector<2x32xf32>
    %58 = vector.extract_strided_slice %40 {offsets = [0, 64], sizes = [2, 32], strides = [1, 1]} : vector<2x96xf32> to vector<2x32xf32>
    %59 = vector.broadcast %7 : vector<1x32xf32> to vector<2x32xf32>
    %60 = arith.addf %58, %59 : vector<2x32xf32>
    %61 = arith.mulf %48, %60 : vector<2x32xf32>
    %62 = arith.addf %57, %61 : vector<2x32xf32>
    %63 = math.tanh %62 : vector<2x32xf32>
    %cst_17 = arith.constant 1.000000e+00 : f32
    %64 = vector.broadcast %cst_17 : f32 to vector<2x32xf32>
    %65 = arith.subf %64, %56 : vector<2x32xf32>
    %66 = arith.mulf %65, %63 : vector<2x32xf32>
    %67 = arith.mulf %56, %38 : vector<2x32xf32>
    %68 = arith.addf %66, %67 : vector<2x32xf32>
    %69 = vector.extract_strided_slice %5 {offsets = [4, 0], sizes = [2, 96], strides = [1, 1]} : vector<16x96xf32> to vector<2x96xf32>
    %cst_18 = arith.constant dense<0.000000e+00> : vector<2x96xf32>
    %70 = tpu.matmul %68, %6, %cst_18 {dimension_numbers = #tpu.dot_dimension_numbers<[1], [0], [0], [1], [0, 0, 1, 1], [], []>} : vector<2x32xf32>, vector<32x96xf32>, vector<2x96xf32> -> vector<2x96xf32>
    %71 = vector.extract_strided_slice %69 {offsets = [0, 0], sizes = [2, 32], strides = [1, 1]} : vector<2x96xf32> to vector<2x32xf32>
    %72 = vector.extract_strided_slice %70 {offsets = [0, 0], sizes = [2, 32], strides = [1, 1]} : vector<2x96xf32> to vector<2x32xf32>
    %73 = arith.addf %71, %72 : vector<2x32xf32>
    %74 = arith.negf %73 : vector<2x32xf32>
    %75 = math.exp %74 : vector<2x32xf32>
    %cst_19 = arith.constant 1.000000e+00 : f32
    %76 = vector.broadcast %cst_19 : f32 to vector<2x32xf32>
    %77 = arith.addf %76, %75 : vector<2x32xf32>
    %78 = arith.divf %76, %77 : vector<2x32xf32>
    %79 = vector.extract_strided_slice %69 {offsets = [0, 32], sizes = [2, 32], strides = [1, 1]} : vector<2x96xf32> to vector<2x32xf32>
    %80 = vector.extract_strided_slice %70 {offsets = [0, 32], sizes = [2, 32], strides = [1, 1]} : vector<2x96xf32> to vector<2x32xf32>
    %81 = arith.addf %79, %80 : vector<2x32xf32>
    %82 = arith.negf %81 : vector<2x32xf32>
    %83 = math.exp %82 : vector<2x32xf32>
    %cst_20 = arith.constant 1.000000e+00 : f32
    %84 = vector.broadcast %cst_20 : f32 to vector<2x32xf32>
    %85 = arith.addf %84, %83 : vector<2x32xf32>
    %86 = arith.divf %84, %85 : vector<2x32xf32>
    %87 = vector.extract_strided_slice %69 {offsets = [0, 64], sizes = [2, 32], strides = [1, 1]} : vector<2x96xf32> to vector<2x32xf32>
    %88 = vector.extract_strided_slice %70 {offsets = [0, 64], sizes = [2, 32], strides = [1, 1]} : vector<2x96xf32> to vector<2x32xf32>
    %89 = vector.broadcast %7 : vector<1x32xf32> to vector<2x32xf32>
    %90 = arith.addf %88, %89 : vector<2x32xf32>
    %91 = arith.mulf %78, %90 : vector<2x32xf32>
    %92 = arith.addf %87, %91 : vector<2x32xf32>
    %93 = math.tanh %92 : vector<2x32xf32>
    %cst_21 = arith.constant 1.000000e+00 : f32
    %94 = vector.broadcast %cst_21 : f32 to vector<2x32xf32>
    %95 = arith.subf %94, %86 : vector<2x32xf32>
    %96 = arith.mulf %95, %93 : vector<2x32xf32>
    %97 = arith.mulf %86, %68 : vector<2x32xf32>
    %98 = arith.addf %96, %97 : vector<2x32xf32>
    %99 = vector.extract_strided_slice %5 {offsets = [6, 0], sizes = [2, 96], strides = [1, 1]} : vector<16x96xf32> to vector<2x96xf32>
    %cst_22 = arith.constant dense<0.000000e+00> : vector<2x96xf32>
    %100 = tpu.matmul %98, %6, %cst_22 {dimension_numbers = #tpu.dot_dimension_numbers<[1], [0], [0], [1], [0, 0, 1, 1], [], []>} : vector<2x32xf32>, vector<32x96xf32>, vector<2x96xf32> -> vector<2x96xf32>
    %101 = vector.extract_strided_slice %99 {offsets = [0, 0], sizes = [2, 32], strides = [1, 1]} : vector<2x96xf32> to vector<2x32xf32>
    %102 = vector.extract_strided_slice %100 {offsets = [0, 0], sizes = [2, 32], strides = [1, 1]} : vector<2x96xf32> to vector<2x32xf32>
    %103 = arith.addf %101, %102 : vector<2x32xf32>
    %104 = arith.negf %103 : vector<2x32xf32>
    %105 = math.exp %104 : vector<2x32xf32>
    %cst_23 = arith.constant 1.000000e+00 : f32
    %106 = vector.broadcast %cst_23 : f32 to vector<2x32xf32>
    %107 = arith.addf %106, %105 : vector<2x32xf32>
    %108 = arith.divf %106, %107 : vector<2x32xf32>
    %109 = vector.extract_strided_slice %99 {offsets = [0, 32], sizes = [2, 32], strides = [1, 1]} : vector<2x96xf32> to vector<2x32xf32>
    %110 = vector.extract_strided_slice %100 {offsets = [0, 32], sizes = [2, 32], strides = [1, 1]} : vector<2x96xf32> to vector<2x32xf32>
    %111 = arith.addf %109, %110 : vector<2x32xf32>
    %112 = arith.negf %111 : vector<2x32xf32>
    %113 = math.exp %112 : vector<2x32xf32>
    %cst_24 = arith.constant 1.000000e+00 : f32
    %114 = vector.broadcast %cst_24 : f32 to vector<2x32xf32>
    %115 = arith.addf %114, %113 : vector<2x32xf32>
    %116 = arith.divf %114, %115 : vector<2x32xf32>
    %117 = vector.extract_strided_slice %99 {offsets = [0, 64], sizes = [2, 32], strides = [1, 1]} : vector<2x96xf32> to vector<2x32xf32>
    %118 = vector.extract_strided_slice %100 {offsets = [0, 64], sizes = [2, 32], strides = [1, 1]} : vector<2x96xf32> to vector<2x32xf32>
    %119 = vector.broadcast %7 : vector<1x32xf32> to vector<2x32xf32>
    %120 = arith.addf %118, %119 : vector<2x32xf32>
    %121 = arith.mulf %108, %120 : vector<2x32xf32>
    %122 = arith.addf %117, %121 : vector<2x32xf32>
    %123 = math.tanh %122 : vector<2x32xf32>
    %cst_25 = arith.constant 1.000000e+00 : f32
    %124 = vector.broadcast %cst_25 : f32 to vector<2x32xf32>
    %125 = arith.subf %124, %116 : vector<2x32xf32>
    %126 = arith.mulf %125, %123 : vector<2x32xf32>
    %127 = arith.mulf %116, %98 : vector<2x32xf32>
    %128 = arith.addf %126, %127 : vector<2x32xf32>
    %129 = vector.extract_strided_slice %5 {offsets = [8, 0], sizes = [2, 96], strides = [1, 1]} : vector<16x96xf32> to vector<2x96xf32>
    %cst_26 = arith.constant dense<0.000000e+00> : vector<2x96xf32>
    %130 = tpu.matmul %128, %6, %cst_26 {dimension_numbers = #tpu.dot_dimension_numbers<[1], [0], [0], [1], [0, 0, 1, 1], [], []>} : vector<2x32xf32>, vector<32x96xf32>, vector<2x96xf32> -> vector<2x96xf32>
    %131 = vector.extract_strided_slice %129 {offsets = [0, 0], sizes = [2, 32], strides = [1, 1]} : vector<2x96xf32> to vector<2x32xf32>
    %132 = vector.extract_strided_slice %130 {offsets = [0, 0], sizes = [2, 32], strides = [1, 1]} : vector<2x96xf32> to vector<2x32xf32>
    %133 = arith.addf %131, %132 : vector<2x32xf32>
    %134 = arith.negf %133 : vector<2x32xf32>
    %135 = math.exp %134 : vector<2x32xf32>
    %cst_27 = arith.constant 1.000000e+00 : f32
    %136 = vector.broadcast %cst_27 : f32 to vector<2x32xf32>
    %137 = arith.addf %136, %135 : vector<2x32xf32>
    %138 = arith.divf %136, %137 : vector<2x32xf32>
    %139 = vector.extract_strided_slice %129 {offsets = [0, 32], sizes = [2, 32], strides = [1, 1]} : vector<2x96xf32> to vector<2x32xf32>
    %140 = vector.extract_strided_slice %130 {offsets = [0, 32], sizes = [2, 32], strides = [1, 1]} : vector<2x96xf32> to vector<2x32xf32>
    %141 = arith.addf %139, %140 : vector<2x32xf32>
    %142 = arith.negf %141 : vector<2x32xf32>
    %143 = math.exp %142 : vector<2x32xf32>
    %cst_28 = arith.constant 1.000000e+00 : f32
    %144 = vector.broadcast %cst_28 : f32 to vector<2x32xf32>
    %145 = arith.addf %144, %143 : vector<2x32xf32>
    %146 = arith.divf %144, %145 : vector<2x32xf32>
    %147 = vector.extract_strided_slice %129 {offsets = [0, 64], sizes = [2, 32], strides = [1, 1]} : vector<2x96xf32> to vector<2x32xf32>
    %148 = vector.extract_strided_slice %130 {offsets = [0, 64], sizes = [2, 32], strides = [1, 1]} : vector<2x96xf32> to vector<2x32xf32>
    %149 = vector.broadcast %7 : vector<1x32xf32> to vector<2x32xf32>
    %150 = arith.addf %148, %149 : vector<2x32xf32>
    %151 = arith.mulf %138, %150 : vector<2x32xf32>
    %152 = arith.addf %147, %151 : vector<2x32xf32>
    %153 = math.tanh %152 : vector<2x32xf32>
    %cst_29 = arith.constant 1.000000e+00 : f32
    %154 = vector.broadcast %cst_29 : f32 to vector<2x32xf32>
    %155 = arith.subf %154, %146 : vector<2x32xf32>
    %156 = arith.mulf %155, %153 : vector<2x32xf32>
    %157 = arith.mulf %146, %128 : vector<2x32xf32>
    %158 = arith.addf %156, %157 : vector<2x32xf32>
    %159 = vector.extract_strided_slice %5 {offsets = [10, 0], sizes = [2, 96], strides = [1, 1]} : vector<16x96xf32> to vector<2x96xf32>
    %cst_30 = arith.constant dense<0.000000e+00> : vector<2x96xf32>
    %160 = tpu.matmul %158, %6, %cst_30 {dimension_numbers = #tpu.dot_dimension_numbers<[1], [0], [0], [1], [0, 0, 1, 1], [], []>} : vector<2x32xf32>, vector<32x96xf32>, vector<2x96xf32> -> vector<2x96xf32>
    %161 = vector.extract_strided_slice %159 {offsets = [0, 0], sizes = [2, 32], strides = [1, 1]} : vector<2x96xf32> to vector<2x32xf32>
    %162 = vector.extract_strided_slice %160 {offsets = [0, 0], sizes = [2, 32], strides = [1, 1]} : vector<2x96xf32> to vector<2x32xf32>
    %163 = arith.addf %161, %162 : vector<2x32xf32>
    %164 = arith.negf %163 : vector<2x32xf32>
    %165 = math.exp %164 : vector<2x32xf32>
    %cst_31 = arith.constant 1.000000e+00 : f32
    %166 = vector.broadcast %cst_31 : f32 to vector<2x32xf32>
    %167 = arith.addf %166, %165 : vector<2x32xf32>
    %168 = arith.divf %166, %167 : vector<2x32xf32>
    %169 = vector.extract_strided_slice %159 {offsets = [0, 32], sizes = [2, 32], strides = [1, 1]} : vector<2x96xf32> to vector<2x32xf32>
    %170 = vector.extract_strided_slice %160 {offsets = [0, 32], sizes = [2, 32], strides = [1, 1]} : vector<2x96xf32> to vector<2x32xf32>
    %171 = arith.addf %169, %170 : vector<2x32xf32>
    %172 = arith.negf %171 : vector<2x32xf32>
    %173 = math.exp %172 : vector<2x32xf32>
    %cst_32 = arith.constant 1.000000e+00 : f32
    %174 = vector.broadcast %cst_32 : f32 to vector<2x32xf32>
    %175 = arith.addf %174, %173 : vector<2x32xf32>
    %176 = arith.divf %174, %175 : vector<2x32xf32>
    %177 = vector.extract_strided_slice %159 {offsets = [0, 64], sizes = [2, 32], strides = [1, 1]} : vector<2x96xf32> to vector<2x32xf32>
    %178 = vector.extract_strided_slice %160 {offsets = [0, 64], sizes = [2, 32], strides = [1, 1]} : vector<2x96xf32> to vector<2x32xf32>
    %179 = vector.broadcast %7 : vector<1x32xf32> to vector<2x32xf32>
    %180 = arith.addf %178, %179 : vector<2x32xf32>
    %181 = arith.mulf %168, %180 : vector<2x32xf32>
    %182 = arith.addf %177, %181 : vector<2x32xf32>
    %183 = math.tanh %182 : vector<2x32xf32>
    %cst_33 = arith.constant 1.000000e+00 : f32
    %184 = vector.broadcast %cst_33 : f32 to vector<2x32xf32>
    %185 = arith.subf %184, %176 : vector<2x32xf32>
    %186 = arith.mulf %185, %183 : vector<2x32xf32>
    %187 = arith.mulf %176, %158 : vector<2x32xf32>
    %188 = arith.addf %186, %187 : vector<2x32xf32>
    %189 = vector.extract_strided_slice %5 {offsets = [12, 0], sizes = [2, 96], strides = [1, 1]} : vector<16x96xf32> to vector<2x96xf32>
    %cst_34 = arith.constant dense<0.000000e+00> : vector<2x96xf32>
    %190 = tpu.matmul %188, %6, %cst_34 {dimension_numbers = #tpu.dot_dimension_numbers<[1], [0], [0], [1], [0, 0, 1, 1], [], []>} : vector<2x32xf32>, vector<32x96xf32>, vector<2x96xf32> -> vector<2x96xf32>
    %191 = vector.extract_strided_slice %189 {offsets = [0, 0], sizes = [2, 32], strides = [1, 1]} : vector<2x96xf32> to vector<2x32xf32>
    %192 = vector.extract_strided_slice %190 {offsets = [0, 0], sizes = [2, 32], strides = [1, 1]} : vector<2x96xf32> to vector<2x32xf32>
    %193 = arith.addf %191, %192 : vector<2x32xf32>
    %194 = arith.negf %193 : vector<2x32xf32>
    %195 = math.exp %194 : vector<2x32xf32>
    %cst_35 = arith.constant 1.000000e+00 : f32
    %196 = vector.broadcast %cst_35 : f32 to vector<2x32xf32>
    %197 = arith.addf %196, %195 : vector<2x32xf32>
    %198 = arith.divf %196, %197 : vector<2x32xf32>
    %199 = vector.extract_strided_slice %189 {offsets = [0, 32], sizes = [2, 32], strides = [1, 1]} : vector<2x96xf32> to vector<2x32xf32>
    %200 = vector.extract_strided_slice %190 {offsets = [0, 32], sizes = [2, 32], strides = [1, 1]} : vector<2x96xf32> to vector<2x32xf32>
    %201 = arith.addf %199, %200 : vector<2x32xf32>
    %202 = arith.negf %201 : vector<2x32xf32>
    %203 = math.exp %202 : vector<2x32xf32>
    %cst_36 = arith.constant 1.000000e+00 : f32
    %204 = vector.broadcast %cst_36 : f32 to vector<2x32xf32>
    %205 = arith.addf %204, %203 : vector<2x32xf32>
    %206 = arith.divf %204, %205 : vector<2x32xf32>
    %207 = vector.extract_strided_slice %189 {offsets = [0, 64], sizes = [2, 32], strides = [1, 1]} : vector<2x96xf32> to vector<2x32xf32>
    %208 = vector.extract_strided_slice %190 {offsets = [0, 64], sizes = [2, 32], strides = [1, 1]} : vector<2x96xf32> to vector<2x32xf32>
    %209 = vector.broadcast %7 : vector<1x32xf32> to vector<2x32xf32>
    %210 = arith.addf %208, %209 : vector<2x32xf32>
    %211 = arith.mulf %198, %210 : vector<2x32xf32>
    %212 = arith.addf %207, %211 : vector<2x32xf32>
    %213 = math.tanh %212 : vector<2x32xf32>
    %cst_37 = arith.constant 1.000000e+00 : f32
    %214 = vector.broadcast %cst_37 : f32 to vector<2x32xf32>
    %215 = arith.subf %214, %206 : vector<2x32xf32>
    %216 = arith.mulf %215, %213 : vector<2x32xf32>
    %217 = arith.mulf %206, %188 : vector<2x32xf32>
    %218 = arith.addf %216, %217 : vector<2x32xf32>
    %219 = vector.extract_strided_slice %5 {offsets = [14, 0], sizes = [2, 96], strides = [1, 1]} : vector<16x96xf32> to vector<2x96xf32>
    %cst_38 = arith.constant dense<0.000000e+00> : vector<2x96xf32>
    %220 = tpu.matmul %218, %6, %cst_38 {dimension_numbers = #tpu.dot_dimension_numbers<[1], [0], [0], [1], [0, 0, 1, 1], [], []>} : vector<2x32xf32>, vector<32x96xf32>, vector<2x96xf32> -> vector<2x96xf32>
    %221 = vector.extract_strided_slice %219 {offsets = [0, 0], sizes = [2, 32], strides = [1, 1]} : vector<2x96xf32> to vector<2x32xf32>
    %222 = vector.extract_strided_slice %220 {offsets = [0, 0], sizes = [2, 32], strides = [1, 1]} : vector<2x96xf32> to vector<2x32xf32>
    %223 = arith.addf %221, %222 : vector<2x32xf32>
    %224 = arith.negf %223 : vector<2x32xf32>
    %225 = math.exp %224 : vector<2x32xf32>
    %cst_39 = arith.constant 1.000000e+00 : f32
    %226 = vector.broadcast %cst_39 : f32 to vector<2x32xf32>
    %227 = arith.addf %226, %225 : vector<2x32xf32>
    %228 = arith.divf %226, %227 : vector<2x32xf32>
    %229 = vector.extract_strided_slice %219 {offsets = [0, 32], sizes = [2, 32], strides = [1, 1]} : vector<2x96xf32> to vector<2x32xf32>
    %230 = vector.extract_strided_slice %220 {offsets = [0, 32], sizes = [2, 32], strides = [1, 1]} : vector<2x96xf32> to vector<2x32xf32>
    %231 = arith.addf %229, %230 : vector<2x32xf32>
    %232 = arith.negf %231 : vector<2x32xf32>
    %233 = math.exp %232 : vector<2x32xf32>
    %cst_40 = arith.constant 1.000000e+00 : f32
    %234 = vector.broadcast %cst_40 : f32 to vector<2x32xf32>
    %235 = arith.addf %234, %233 : vector<2x32xf32>
    %236 = arith.divf %234, %235 : vector<2x32xf32>
    %237 = vector.extract_strided_slice %219 {offsets = [0, 64], sizes = [2, 32], strides = [1, 1]} : vector<2x96xf32> to vector<2x32xf32>
    %238 = vector.extract_strided_slice %220 {offsets = [0, 64], sizes = [2, 32], strides = [1, 1]} : vector<2x96xf32> to vector<2x32xf32>
    %239 = vector.broadcast %7 : vector<1x32xf32> to vector<2x32xf32>
    %240 = arith.addf %238, %239 : vector<2x32xf32>
    %241 = arith.mulf %228, %240 : vector<2x32xf32>
    %242 = arith.addf %237, %241 : vector<2x32xf32>
    %243 = math.tanh %242 : vector<2x32xf32>
    %cst_41 = arith.constant 1.000000e+00 : f32
    %244 = vector.broadcast %cst_41 : f32 to vector<2x32xf32>
    %245 = arith.subf %244, %236 : vector<2x32xf32>
    %246 = arith.mulf %245, %243 : vector<2x32xf32>
    %247 = arith.mulf %236, %218 : vector<2x32xf32>
    %248 = arith.addf %246, %247 : vector<2x32xf32>
    %c0_42 = arith.constant 0 : index
    %c0_43 = arith.constant 0 : index
    %249 = vector.load %arg5[%c0_42, %c0_43] : memref<1x32xf32, #tpu.memory_space<vmem>>, vector<1x32xf32>
    %250 = vector.broadcast %249 : vector<1x32xf32> to vector<2x32xf32>
    %251 = arith.mulf %248, %250 : vector<2x32xf32>
    %cst_44 = arith.constant dense<0.000000e+00> : vector<2xf32>
    %252 = vector.multi_reduction <add>, %251, %cst_44 [1] : vector<2x32xf32> to vector<2xf32>
    %253 = vector.shape_cast %252 : vector<2xf32> to vector<2x1xf32>
    %c0_45 = arith.constant 0 : index
    %c0_46 = arith.constant 0 : index
    %254 = vector.load %arg6[%c0_45, %c0_46] : memref<1x1xf32, #tpu.memory_space<vmem>>, vector<1x1xf32>
    %255 = vector.broadcast %254 : vector<1x1xf32> to vector<2x1xf32>
    %256 = arith.addf %253, %255 : vector<2x1xf32>
    %257 = arith.negf %256 : vector<2x1xf32>
    %258 = math.exp %257 : vector<2x1xf32>
    %cst_47 = arith.constant 1.000000e+00 : f32
    %259 = vector.broadcast %cst_47 : f32 to vector<2x1xf32>
    %260 = arith.addf %259, %258 : vector<2x1xf32>
    %261 = arith.divf %259, %260 : vector<2x1xf32>
    %c0_48 = arith.constant 0 : index
    %c0_49 = arith.constant 0 : index
    %262 = vector.load %arg7[%c0_48, %c0_49] : memref<2x1xf32, #tpu.memory_space<vmem>>, vector<2x1xf32>
    tpu.vector_store %arg7[%c0_48, %c0_49], %261 {strides = array<i32>} : memref<2x1xf32, #tpu.memory_space<vmem>>, vector<2x1xf32>,
    return
  }
}

</mosaic_0001>

<bundles_post_ra>
// kernel: char_gru_forward.1
= control target key start
LH: loop header
LB: loop body
LE: loop exit
PB: predicated region body
PF: predicated region fallthrough
CT: control target
= control target key end

     0   :  { %v1247_v0 = vmov 0.0   ;;  %vm1248_vm0 = vmmov 0   ;;  %vm39_vm1 = vcmask 130048   ;;  %vm126_vm2 = vcmask 261120   ;;  %s1251_s20 = smov 32   ;;  %s1490_s1 = inlined_call_operand.vmem [shape: f32[16,96], index: 1, kind: input, shape index: {}]   ;;  %s1491_s2 = inlined_call_operand.vmem [shape: f32[32,96], index: 2, kind: input, shape index: {}]   ;;  %s1492_s0 = inlined_call_operand.vmem [shape: f32[16,16], index: 0, kind: input, shape index: {}]   ;;  %s1493_s4 = inlined_call_operand.vmem [shape: f32[1,32], index: 4, kind: input, shape index: {}]   ;;  %s1494_s3 = inlined_call_operand.vmem [shape: f32[1,96], index: 3, kind: input, shape index: {}]   ;;  %s1495_s5 = inlined_call_operand.vmem [shape: f32[1,32], index: 5, kind: input, shape index: {}]   ;;  %s1496_s6 = inlined_call_operand.<no memory space> [shape: f32[1,1], index: 6, kind: input, shape index: {}]   ;;  %s1497_s7 = inlined_call_operand.vmem [shape: f32[2,1], index: 7, kind: output, shape index: {}]  }
   0x1   :  { %1102 = vmatprep.subr.mxu1 %v1247_v0  ;;  %v31_v1 = vld [vmem:[%s1490_s1 + $0x8] sm:$0xff]  ;;  %v1299_v2 = vld [vmem:[%s1491_s2 + $0x18] sm:$0xff]  ;;  %v30_v3 = vld [vmem:[%s1490_s1] sm:$0xff]  ;;  %1110 = vmatprep.mubr.msk.f32.mxu1 %vm1248_vm0, %v1247_v0  ;;  %vm1005_vm3 = vcmask 261126   ;;  %vm1023_vm4 = vcmask 7174  }
   0x2   :  { %1095 = vmatprep.subr.mxu0 %v31_v1  ;;  %1103 = vmatpush3.msra.mxu1 %v1299_v2  ;;  %v1310_v4 = vld [vmem:[%s1491_s2 + $0x10] sm:$0xff]  ;;  %v28_v5 = vld [vmem:[%s1492_s0] sm:$0xff]  ;;  %v29_v6 = vld [vmem:[%s1492_s0 + $0x8] sm:$0xff]  ;;  %s1249_s0 = smov 64  }
   0x3   :  { %1096 = vmatpush3.msra.mxu0 %v31_v1  ;;  %1104 = vmatprep.subr.mxu1 %v1247_v0  ;;  %v1323_v7 = vld [vmem:[%s1491_s2 + $0x8] sm:$0xff]  ;;  %v1033_v8 = vld [vmem:[%s1493_s4] ss:$0 sm:$0xff] }
   0x4   :  { %1097 = vmatprep.subr.mxu0 %v30_v3  ;;  %1105 = vmatpush3.msra.mxu1 %v1310_v4  ;;  %v1332_v9 = vld [vmem:[%s1491_s2] sm:$0xff] }
   0x5   :  { %1098 = vmatpush3.msra.mxu0 %v30_v3  ;;  %1099 = vmatprep.mubr.msk.f32.mxu0 %vm39_vm1, %v28_v5  ;;  %v1029_v11 = vld [vmem:[%s1494_s3] ss:$0 sm:$0xff]  ;;  %s1250_s3 = smov 96  }
   0x6   :  { %1106 = vmatprep.subr.mxu1 %v1247_v0  ;;  %1100 = vmatmul.mubr.msk.f32.vlgmr.msra.gmra.mxu0 %vm39_vm1, %v29_v6 }
   0x7   :  { %1107 = vmatpush3.msra.mxu1 %v1323_v7  ;;  %212 = vrot.lane.b32.xlu0 %v1033_v8, %s1249_s0 }
   0x8   :  { %1108 = vmatprep.subr.mxu1 %v1247_v0  ;;  %1113 = vmatprep.subr.mxu0 %v1247_v0 }
   0x9   :  { %1109 = vmatpush3.msra.mxu1 %v1332_v9  ;;  %1114 = vmatpush3.msra.mxu0 %v1299_v2 }
   0xa   :  { %1111 = vmatmul.mubr.f32.vlgmr.msra.gmra.mxu1 %v1247_v0  ;;  %1115 = vmatprep.subr.mxu0 %v1247_v0 }
   0xb   :  { %1116 = vmatpush3.msra.mxu0 %v1310_v4  ;;  %1121 = vmatprep.mubr.msk.f32.mxu0 %vm1248_vm0, %v1247_v0 }
   0xc   :  { %1117 = vmatprep.subr.mxu0 %v1247_v0  ;;  %1124 = vmatprep.subr.mxu1 %v1247_v0 }
   0xd   :  { %1118 = vmatpush3.msra.mxu0 %v1323_v7  ;;  %1125 = vmatpush3.msra.mxu1 %v1299_v2 }
   0xe   :  { %1119 = vmatprep.subr.mxu0 %v1247_v0  ;;  %1126 = vmatprep.subr.mxu1 %v1247_v0 }
   0xf   :  { %1120 = vmatpush3.msra.mxu0 %v1332_v9  ;;  %1127 = vmatpush3.msra.mxu1 %v1310_v4 }
  0x10   :  { %1128 = vmatprep.subr.mxu1 %v1247_v0  ;;  %1132 = vmatprep.mubr.msk.f32.mxu1 %vm1248_vm0, %v1247_v0 }
  0x11   :  { %1129 = vmatpush3.msra.mxu1 %v1323_v7  ;;  %1135 = vmatprep.subr.mxu0 %v1247_v0 }
  0x12   :  { %1130 = vmatprep.subr.mxu1 %v1247_v0 }
  0x13   :  { %1131 = vmatpush3.msra.mxu1 %v1332_v9 }
  0x14   :  { %1146 = vmatprep.subr.mxu1 %v1247_v0 }
  0x79   :  { %v1366_v13 = vpop.permute.xlu0 %212 }
  0xc6   :  { %v1101_v10 = vpop.f32.mrf.mxu0 }
  0xc7   :  { %v1364_v12 = vadd.f32 %v1101_v10, %v1029_v11 }
  0xc8   :  { %v112_v17 = vpop.f32.mrf.mxu0 }
  0xc9   :  { %v1370_v18 = vadd.f32 %v1029_v11, %v112_v17 }
  0xca   :  { %v196_v14 = vpop.f32.mrf.mxu1 }
  0xcb   :  { %v215_v15 = vadd.f32 %v1366_v13, %v196_v14  ;;  %v200_v19 = vadd.f32 %v196_v14, %v1370_v18 }
  0xcc   :  { %v1112_v16 = vpop.f32.mrf.mxu1 }
  0xcd   :  { %217 = vrot.lane.b32.xlu0 %v215_v15, %s1249_s0  ;;  %v1032_v20 = vmul.f32 -1.442695, %v200_v19 }
  0xcf   :  { %1195 = vpow2.f32 %v1032_v20 }
  0xdc   :  { %v1196_v21 = vpop.eup %1195 }
  0xdd   :  { %v204_v22 = vadd.f32 1.0, %v1196_v21 }
  0xdf   :  { %1197 = vrcp.f32 %v204_v22 }
  0xec   :  { %v1198_v23 = vpop.eup %1197 }
  0xed   :  { %v227_v29 = vsub.f32 1.0, %v1198_v23  ;;  %v233_v31 = vmul.f32 0.0, %v1198_v23 }
 0x13f   :  { %v218_v24 = vpop.permute.xlu0 %217 }
 0x140   :  { %v220_v25 = vmul.f32 %v1198_v23, %v218_v24 }
 0x142   :  { %222 = vrot.lane.b32.xlu1 %v220_v25, %s1249_s0 }
 0x1b4   :  { %v223_v26 = vpop.permute.xlu1 %222 }
 0x1b5   :  { %v225_v27 = vadd.f32 %v223_v26, %v1370_v18 }
 0x1b7   :  { %1199 = vtanh.f32 %v225_v27 }
 0x1c4   :  { %v1200_v28 = vpop.eup %1199 }
 0x1c5   :  { %229 = vrot.lane.b32.xlu1 %v1200_v28, %s1250_s3 }
 0x237   :  { %v230_v30 = vpop.permute.xlu1 %229 }
 0x238   :  { %v232_v32 = vmul.f32 %v230_v30, %v227_v29 }
 0x23a   :  { %v234_v33 = vadd.f32 %v233_v31, %v232_v32 }
 0x23c   :  { %236 = vrot.lane.b32.xlu0 %v234_v33, %s1250_s3  ;;  %v339_v50 = vrot.slane %v234_v33, 6 }
 0x2ae   :  { %v237_v34 = vpop.permute.xlu0 %236 }
 0x2af   :  { %1122 = vmatmul.mubr.msk.f32.vlgmr.msra.gmra.mxu0 %vm126_vm2, %v237_v34 }
 0x2b0   :  { %1136 = vmatpush3.msra.mxu0 %v1299_v2  ;;  %1143 = vmatprep.mubr.msk.f32.mxu0 %vm1248_vm0, %v1247_v0 }
 0x2b1   :  { %1137 = vmatprep.subr.mxu0 %v1247_v0 }
 0x2b2   :  { %1138 = vmatpush3.msra.mxu0 %v1310_v4 }
 0x2b3   :  { %1139 = vmatprep.subr.mxu0 %v1247_v0 }
 0x2b4   :  { %1140 = vmatpush3.msra.mxu0 %v1323_v7 }
 0x2b5   :  { %1141 = vmatprep.subr.mxu0 %v1247_v0 }
 0x2b6   :  { %1142 = vmatpush3.msra.mxu0 %v1332_v9 }
 0x2b7   :  { %1157 = vmatprep.subr.mxu0 %v1247_v0 }
 0x36f   :  { %v306_v35 = vpop.f32.mrf.mxu0 }
 0x370   :  { %v320_v36 = vadd.f32 %v306_v35, %v1366_v13  ;;  %v311_v39 = vrot.slane %v306_v35, 6 }
 0x371   :  { %v1123_v37 = vpop.f32.mrf.mxu0 }
 0x372   :  { %v322_v38 = vrot.slane %v320_v36, 6  ;;  %v313_v40 = vadd.f32 %v311_v39, %v1370_v18 }
 0x374   :  { %323 = vrot.lane.b32.xlu1 %v322_v38, %s1249_s0  ;;  %v1035_v41 = vmul.f32 -1.442695, %v313_v40 }
 0x376   :  { %1201 = vpow2.f32 %v1035_v41 }
 0x383   :  { %v1202_v42 = vpop.eup %1201 }
 0x384   :  { %v317_v43 = vadd.f32 1.0, %v1202_v42 }
 0x386   :  { %1203 = vrcp.f32 %v317_v43 }
 0x393   :  { %v1204_v44 = vpop.eup %1203 }
 0x394   :  { %v333_v51 = vsub.f32 1.0, %v1204_v44  ;;  %v341_v54 = vmul.f32 %v1204_v44, %v339_v50 }
 0x3e6   :  { %v324_v45 = vpop.permute.xlu1 %323 }
 0x3e7   :  { %v326_v46 = vmul.f32 %v1204_v44, %v324_v45 }
 0x3e9   :  { %328 = vrot.lane.b32.xlu0 %v326_v46, %s1249_s0 }
 0x45b   :  { %v329_v47 = vpop.permute.xlu0 %328 }
 0x45c   :  { %v331_v48 = vadd.f32 %v329_v47, %v1370_v18 }
 0x45e   :  { %1205 = vtanh.f32 %v331_v48 }
 0x46b   :  { %v1206_v49 = vpop.eup %1205 }
 0x46c   :  { %335 = vrot.lane.b32.xlu1 %v1206_v49, %s1250_s3 }
 0x4de   :  { %v336_v52 = vpop.permute.xlu1 %335 }
 0x4df   :  { %v338_v53 = vmul.f32 %v336_v52, %v333_v51 }
 0x4e1   :  { %v342_v55 = vadd.f32 %v341_v54, %v338_v53 }
 0x4e3   :  { %v344_v56 = vrot.slane %v342_v55, 2  ;;  %v448_v16 = vrot.slane %v342_v55, 6 }
 0x4e5   :  { %345 = vrot.lane.b32.xlu0 %v344_v56, %s1250_s3 }
 0x557   :  { %v346_v57 = vpop.permute.xlu0 %345 }
 0x558   :  { %1133 = vmatmul.mubr.msk.f32.vlgmr.msra.gmra.mxu1 %vm126_vm2, %v346_v57 }
 0x559   :  { %1147 = vmatpush3.msra.mxu1 %v1299_v2  ;;  %1154 = vmatprep.mubr.msk.f32.mxu1 %vm1248_vm0, %v1247_v0 }
 0x55a   :  { %1148 = vmatprep.subr.mxu1 %v1247_v0 }
 0x55b   :  { %1149 = vmatpush3.msra.mxu1 %v1310_v4 }
 0x55c   :  { %1150 = vmatprep.subr.mxu1 %v1247_v0 }
 0x55d   :  { %1151 = vmatpush3.msra.mxu1 %v1323_v7 }
 0x55e   :  { %1152 = vmatprep.subr.mxu1 %v1247_v0 }
 0x55f   :  { %1153 = vmatpush3.msra.mxu1 %v1332_v9 }
 0x560   :  { %1168 = vmatprep.subr.mxu1 %v1247_v0 }
 0x618   :  { %v415_v58 = vpop.f32.mrf.mxu1 }
 0x619   :  { %v429_v59 = vadd.f32 %v415_v58, %v1366_v13  ;;  %v420_v62 = vrot.slane %v415_v58, 4 }
 0x61a   :  { %v1134_v60 = vpop.f32.mrf.mxu1 }
 0x61b   :  { %v431_v61 = vrot.slane %v429_v59, 4  ;;  %v422_v63 = vadd.f32 %v420_v62, %v1370_v18 }
 0x61d   :  { %432 = vrot.lane.b32.xlu1 %v431_v61, %s1249_s0  ;;  %v1037_v1 = vmul.f32 -1.442695, %v422_v63 }
 0x61f   :  { %1207 = vpow2.f32 %v1037_v1 }
 0x62c   :  { %v1208_v3 = vpop.eup %1207 }
 0x62d   :  { %v426_v5 = vadd.f32 1.0, %v1208_v3 }
 0x62f   :  { %1209 = vrcp.f32 %v426_v5 }
 0x63c   :  { %v1210_v6 = vpop.eup %1209 }
 0x63d   :  { %v442_v17 = vsub.f32 1.0, %v1210_v6  ;;  %v450_v20 = vmul.f32 %v1210_v6, %v448_v16 }
 0x68f   :  { %v433_v8 = vpop.permute.xlu1 %432 }
 0x690   :  { %v435_v10 = vmul.f32 %v1210_v6, %v433_v8 }
 0x692   :  { %437 = vrot.lane.b32.xlu0 %v435_v10, %s1249_s0 }
 0x704   :  { %v438_v11 = vpop.permute.xlu0 %437 }
 0x705   :  { %v440_v14 = vadd.f32 %v438_v11, %v1370_v18 }
 0x707   :  { %1211 = vtanh.f32 %v440_v14 }
 0x714   :  { %v1212_v15 = vpop.eup %1211 }
 0x715   :  { %444 = vrot.lane.b32.xlu1 %v1212_v15, %s1250_s3 }
 0x787   :  { %v445_v19 = vpop.permute.xlu1 %444 }
 0x788   :  { %v447_v21 = vmul.f32 %v445_v19, %v442_v17 }
 0x78a   :  { %v451_v22 = vadd.f32 %v450_v20, %v447_v21 }
 0x78c   :  { %v453_v23 = vrot.slane %v451_v22, 4  ;;  %v557_v40 = vrot.slane %v451_v22, 6 }
 0x78e   :  { %454 = vrot.lane.b32.xlu0 %v453_v23, %s1250_s3 }
 0x800   :  { %v455_v24 = vpop.permute.xlu0 %454 }
 0x801   :  { %1144 = vmatmul.mubr.msk.f32.vlgmr.msra.gmra.mxu0 %vm126_vm2, %v455_v24 }
 0x802   :  { %1158 = vmatpush3.msra.mxu0 %v1299_v2  ;;  %1165 = vmatprep.mubr.msk.f32.mxu0 %vm1248_vm0, %v1247_v0 }
 0x803   :  { %1159 = vmatprep.subr.mxu0 %v1247_v0 }
 0x804   :  { %1160 = vmatpush3.msra.mxu0 %v1310_v4 }
 0x805   :  { %1161 = vmatprep.subr.mxu0 %v1247_v0 }
 0x806   :  { %1162 = vmatpush3.msra.mxu0 %v1323_v7 }
 0x807   :  { %1163 = vmatprep.subr.mxu0 %v1247_v0 }
 0x808   :  { %1164 = vmatpush3.msra.mxu0 %v1332_v9 }
 0x809   :  { %1179 = vmatprep.subr.mxu0 %v1247_v0 }
 0x8c1   :  { %v524_v25 = vpop.f32.mrf.mxu0 }
 0x8c2   :  { %v538_v26 = vadd.f32 %v524_v25, %v1366_v13  ;;  %v529_v29 = vrot.slane %v524_v25, 2 }
 0x8c3   :  { %v1145_v27 = vpop.f32.mrf.mxu0 }
 0x8c4   :  { %v540_v28 = vrot.slane %v538_v26, 2  ;;  %v531_v30 = vadd.f32 %v529_v29, %v1370_v18 }
 0x8c6   :  { %541 = vrot.lane.b32.xlu1 %v540_v28, %s1249_s0  ;;  %v1039_v31 = vmul.f32 -1.442695, %v531_v30 }
 0x8c8   :  { %1213 = vpow2.f32 %v1039_v31 }
 0x8d5   :  { %v1214_v32 = vpop.eup %1213 }
 0x8d6   :  { %v535_v33 = vadd.f32 1.0, %v1214_v32 }
 0x8d8   :  { %1215 = vrcp.f32 %v535_v33 }
 0x8e5   :  { %v1216_v34 = vpop.eup %1215 }
 0x8e6   :  { %v551_v41 = vsub.f32 1.0, %v1216_v34  ;;  %v559_v43 = vmul.f32 %v1216_v34, %v557_v40 }
 0x938   :  { %v542_v35 = vpop.permute.xlu1 %541 }
 0x939   :  { %v544_v36 = vmul.f32 %v1216_v34, %v542_v35 }
 0x93b   :  { %546 = vrot.lane.b32.xlu0 %v544_v36, %s1249_s0 }
 0x9ad   :  { %v547_v37 = vpop.permute.xlu0 %546 }
 0x9ae   :  { %v549_v38 = vadd.f32 %v547_v37, %v1370_v18 }
 0x9b0   :  { %1217 = vtanh.f32 %v549_v38 }
 0x9bd   :  { %v1218_v39 = vpop.eup %1217 }
 0x9be   :  { %553 = vrot.lane.b32.xlu1 %v1218_v39, %s1250_s3 }
 0xa30   :  { %v554_v42 = vpop.permute.xlu1 %553 }
 0xa31   :  { %v556_v44 = vmul.f32 %v554_v42, %v551_v41 }
 0xa33   :  { %v560_v45 = vadd.f32 %v559_v43, %v556_v44 }
 0xa35   :  { %v562_v46 = vrot.slane %v560_v45, 6 }
 0xa37   :  { %563 = vrot.lane.b32.xlu0 %v562_v46, %s1250_s3 }
 0xaa9   :  { %v564_v47 = vpop.permute.xlu0 %563 }
 0xaaa   :  { %1155 = vmatmul.mubr.msk.f32.vlgmr.msra.gmra.mxu1 %vm126_vm2, %v564_v47 }
 0xaab   :  { %1169 = vmatpush3.msra.mxu1 %v1299_v2  ;;  %1176 = vmatprep.mubr.msk.f32.mxu1 %vm1248_vm0, %v1247_v0 }
 0xaac   :  { %1170 = vmatprep.subr.mxu1 %v1247_v0 }
 0xaad   :  { %1171 = vmatpush3.msra.mxu1 %v1310_v4 }
 0xaae   :  { %1172 = vmatprep.subr.mxu1 %v1247_v0 }
 0xaaf   :  { %1173 = vmatpush3.msra.mxu1 %v1323_v7 }
 0xab0   :  { %1174 = vmatprep.subr.mxu1 %v1247_v0 }
 0xab1   :  { %1175 = vmatpush3.msra.mxu1 %v1332_v9 }
 0xb6a   :  { %v633_v18 = vpop.f32.mrf.mxu1 }
 0xb6b   :  { %v644_v48 = vadd.f32 %v633_v18, %v1366_v13  ;;  %v637_v50 = vadd.f32 %v633_v18, %v1364_v12 }
 0xb6c   :  { %v1156_v49 = vpop.f32.mrf.mxu1 }
 0xb6d   :  { %646 = vrot.lane.b32.xlu1 %v644_v48, %s1249_s0  ;;  %v1041_v51 = vmul.f32 -1.442695, %v637_v50 }
 0xb6f   :  { %1219 = vpow2.f32 %v1041_v51 }
 0xb7c   :  { %v1220_v52 = vpop.eup %1219 }
 0xb7d   :  { %v641_v53 = vadd.f32 1.0, %v1220_v52 }
 0xb7f   :  { %1221 = vrcp.f32 %v641_v53 }
 0xb8c   :  { %v1222_v54 = vpop.eup %1221 }
 0xb8d   :  { %v656_v60 = vsub.f32 1.0, %v1222_v54  ;;  %v663_v62 = vmul.f32 %v1222_v54, %v562_v46 }
 0xbdf   :  { %v647_v55 = vpop.permute.xlu1 %646 }
 0xbe0   :  { %v649_v56 = vmul.f32 %v1222_v54, %v647_v55 }
 0xbe2   :  { %651 = vrot.lane.b32.xlu0 %v649_v56, %s1249_s0 }
 0xc54   :  { %v652_v57 = vpop.permute.xlu0 %651 }
 0xc55   :  { %v654_v58 = vadd.f32 %v652_v57, %v1364_v12 }
 0xc57   :  { %1223 = vtanh.f32 %v654_v58 }
 0xc64   :  { %v1224_v59 = vpop.eup %1223 }
 0xc65   :  { %658 = vrot.lane.b32.xlu1 %v1224_v59, %s1250_s3 }
 0xcd7   :  { %v659_v61 = vpop.permute.xlu1 %658 }
 0xcd8   :  { %v661_v63 = vmul.f32 %v659_v61, %v656_v60 }
 0xcda   :  { %v664_v1 = vadd.f32 %v663_v62, %v661_v63 }
 0xcdc   :  { %666 = vrot.lane.b32.xlu0 %v664_v1, %s1250_s3  ;;  %v769_v20 = vrot.slane %v664_v1, 6 }
 0xd4e   :  { %v667_v3 = vpop.permute.xlu0 %666 }
 0xd4f   :  { %1166 = vmatmul.mubr.msk.f32.vlgmr.msra.gmra.mxu0 %vm126_vm2, %v667_v3  ;;  %v12_v3 = vstv %s1496_s6 }
 0xd50   :  { %1180 = vmatpush3.msra.mxu0 %v1299_v2  ;;  %1187 = vmatprep.mubr.msk.f32.mxu0 %vm1248_vm0, %v1247_v0  ;;  %13 = vst [vmem:[#allocation2] sm:$0x1] %v12_v3 }
 0xd51   :  { %1181 = vmatprep.subr.mxu0 %v1247_v0 }
 0xd52   :  { %1182 = vmatpush3.msra.mxu0 %v1310_v4 }
 0xd53   :  { %1183 = vmatprep.subr.mxu0 %v1247_v0 }
 0xd54   :  { %1184 = vmatpush3.msra.mxu0 %v1323_v7 }
 0xd55   :  { %1185 = vmatprep.subr.mxu0 %v1247_v0 }
 0xd56   :  { %1186 = vmatpush3.msra.mxu0 %v1332_v9 }
 0xe0f   :  { %v736_v5 = vpop.f32.mrf.mxu0 }
 0xe10   :  { %v750_v6 = vadd.f32 %v736_v5, %v1366_v13  ;;  %v741_v10 = vrot.slane %v736_v5, 6 }
 0xe11   :  { %v1167_v8 = vpop.f32.mrf.mxu0 }
 0xe12   :  { %v752_v2 = vrot.slane %v750_v6, 6  ;;  %v743_v11 = vadd.f32 %v741_v10, %v1364_v12 }
 0xe14   :  { %753 = vrot.lane.b32.xlu1 %v752_v2, %s1249_s0  ;;  %v1043_v14 = vmul.f32 -1.442695, %v743_v11 }
 0xe16   :  { %1225 = vpow2.f32 %v1043_v14 }
 0xe23   :  { %v1226_v4 = vpop.eup %1225 }
 0xe24   :  { %v747_v15 = vadd.f32 1.0, %v1226_v4 }
 0xe26   :  { %1227 = vrcp.f32 %v747_v15 }
 0xe33   :  { %v1228_v7 = vpop.eup %1227 }
 0xe34   :  { %v763_v21 = vsub.f32 1.0, %v1228_v7  ;;  %v771_v24 = vmul.f32 %v1228_v7, %v769_v20 }
 0xe86   :  { %v754_v16 = vpop.permute.xlu1 %753 }
 0xe87   :  { %v756_v0 = vmul.f32 %v1228_v7, %v754_v16  ;;  %v1049_v7 = vld [vmem:[#allocation2] ss:$0 sm:$0xff] }
 0xe89   :  { %758 = vrot.lane.b32.xlu0 %v756_v0, %s1249_s0 }
 0xefb   :  { %v759_v9 = vpop.permute.xlu0 %758 }
 0xefc   :  { %v761_v17 = vadd.f32 %v759_v9, %v1364_v12 }
 0xefe   :  { %1229 = vtanh.f32 %v761_v17 }
 0xf0b   :  { %v1230_v19 = vpop.eup %1229 }
 0xf0c   :  { %765 = vrot.lane.b32.xlu1 %v1230_v19, %s1250_s3 }
 0xf7e   :  { %v766_v22 = vpop.permute.xlu1 %765 }
 0xf7f   :  { %v768_v23 = vmul.f32 %v766_v22, %v763_v21 }
 0xf81   :  { %v772_v25 = vadd.f32 %v771_v24, %v768_v23 }
 0xf83   :  { %v774_v26 = vrot.slane %v772_v25, 2  ;;  %v878_v43 = vrot.slane %v772_v25, 6 }
 0xf85   :  { %775 = vrot.lane.b32.xlu0 %v774_v26, %s1250_s3 }
 0xff7   :  { %v776_v27 = vpop.permute.xlu0 %775 }
 0xff8   :  { %1177 = vmatmul.mubr.msk.f32.vlgmr.msra.gmra.mxu1 %vm126_vm2, %v776_v27 }
0x10b8   :  { %v845_v28 = vpop.f32.mrf.mxu1 }
0x10b9   :  { %v859_v29 = vadd.f32 %v845_v28, %v1366_v13  ;;  %v850_v32 = vrot.slane %v845_v28, 4 }
0x10ba   :  { %v1178_v30 = vpop.f32.mrf.mxu1 }
0x10bb   :  { %v861_v31 = vrot.slane %v859_v29, 4  ;;  %v852_v33 = vadd.f32 %v850_v32, %v1364_v12 }
0x10bd   :  { %862 = vrot.lane.b32.xlu1 %v861_v31, %s1249_s0  ;;  %v1045_v34 = vmul.f32 -1.442695, %v852_v33 }
0x10bf   :  { %1231 = vpow2.f32 %v1045_v34 }
0x10cc   :  { %v1232_v35 = vpop.eup %1231 }
0x10cd   :  { %v856_v36 = vadd.f32 1.0, %v1232_v35 }
0x10cf   :  { %1233 = vrcp.f32 %v856_v36 }
0x10dc   :  { %v1234_v37 = vpop.eup %1233 }
0x10dd   :  { %v872_v44 = vsub.f32 1.0, %v1234_v37  ;;  %v880_v46 = vmul.f32 %v1234_v37, %v878_v43 }
0x112f   :  { %v863_v38 = vpop.permute.xlu1 %862 }
0x1130   :  { %v865_v39 = vmul.f32 %v1234_v37, %v863_v38 }
0x1132   :  { %867 = vrot.lane.b32.xlu0 %v865_v39, %s1249_s0 }
0x11a4   :  { %v868_v40 = vpop.permute.xlu0 %867 }
0x11a5   :  { %v870_v41 = vadd.f32 %v868_v40, %v1364_v12 }
0x11a7   :  { %1235 = vtanh.f32 %v870_v41 }
0x11b4   :  { %v1236_v42 = vpop.eup %1235 }
0x11b5   :  { %874 = vrot.lane.b32.xlu1 %v1236_v42, %s1250_s3 }
0x1227   :  { %v875_v45 = vpop.permute.xlu1 %874 }
0x1228   :  { %v877_v47 = vmul.f32 %v875_v45, %v872_v44 }
0x122a   :  { %v881_v18 = vadd.f32 %v880_v46, %v877_v47 }
0x122c   :  { %v883_v48 = vrot.slane %v881_v18, 4  ;;  %v987_v5 = vrot.slane %v881_v18, 6 }
0x122e   :  { %884 = vrot.lane.b32.xlu0 %v883_v48, %s1250_s3 }
0x12a0   :  { %v885_v49 = vpop.permute.xlu0 %884 }
0x12a1   :  { %1188 = vmatmul.mubr.msk.f32.vlgmr.msra.gmra.mxu0 %vm126_vm2, %v885_v49 }
0x1361   :  { %v954_v50 = vpop.f32.mrf.mxu0 }
0x1362   :  { %v968_v51 = vadd.f32 %v954_v50, %v1366_v13  ;;  %v959_v54 = vrot.slane %v954_v50, 2  ;;  %v1048_v13 = vld [vmem:[%s1495_s5] ss:$0 sm:$0xff] }
0x1363   :  { %v1189_v52 = vpop.f32.mrf.mxu0 }
0x1364   :  { %v970_v53 = vrot.slane %v968_v51, 2  ;;  %v961_v55 = vadd.f32 %v959_v54, %v1364_v12 }
0x1366   :  { %971 = vrot.lane.b32.xlu1 %v970_v53, %s1249_s0  ;;  %v1047_v56 = vmul.f32 -1.442695, %v961_v55 }
0x1368   :  { %1237 = vpow2.f32 %v1047_v56 }
0x1375   :  { %v1238_v57 = vpop.eup %1237 }
0x1376   :  { %v965_v58 = vadd.f32 1.0, %v1238_v57 }
0x1378   :  { %1239 = vrcp.f32 %v965_v58 }
0x1385   :  { %v1240_v59 = vpop.eup %1239 }
0x1386   :  { %v981_v6 = vsub.f32 1.0, %v1240_v59  ;;  %v989_v10 = vmul.f32 %v1240_v59, %v987_v5 }
0x13d8   :  { %v972_v60 = vpop.permute.xlu1 %971 }
0x13d9   :  { %v974_v61 = vmul.f32 %v1240_v59, %v972_v60 }
0x13db   :  { %976 = vrot.lane.b32.xlu0 %v974_v61, %s1249_s0 }
0x13df   :  { %997 = vrot.lane.b32.xlu0 %v1048_v13, %s1251_s20 }
0x144d   :  { %v977_v62 = vpop.permute.xlu0 %976 }
0x144e   :  { %v979_v63 = vadd.f32 %v977_v62, %v1364_v12 }
0x1450   :  { %1241 = vtanh.f32 %v979_v63 }
0x1451   :  { %v998_v11 = vpop.permute.xlu0 %997 }
0x145d   :  { %v1242_v1 = vpop.eup %1241 }
0x145e   :  { %983 = vrot.lane.b32.xlu1 %v1242_v1, %s1250_s3 }
0x14d0   :  { %v984_v8 = vpop.permute.xlu1 %983 }
0x14d1   :  { %v986_v2 = vmul.f32 %v984_v8, %v981_v6 }
0x14d3   :  { %v990_v14 = vadd.f32 %v989_v10, %v986_v2 }
0x14d5   :  { %v1000_v4 = vmul.f32 %v998_v11, %v990_v14 }
0x14d7   :  { %1002 = vrot.lane.b32.xlu1 %v1000_v4, %s1250_s3 }
0x1549   :  { %v1003_v12 = vpop.permute.xlu1 %1002 }
0x154a   :  { %v1006_v15 = vsel %vm1005_vm3, %v1003_v12, 0.0 }
0x154b   :  { %1007 = vadd.xlane.f32.xlu0 %v1006_v15 }
0x15d4   :  { %v1008_v16 = vpop.xlane.xlu0 %1007 }
0x15d5   :  { %v1016_v0 = vadd.f32 %v1049_v7, %v1008_v16 }
0x15d7   :  { %v1050_v9 = vmul.f32 -1.442695, %v1016_v0 }
0x15d9   :  { %1243 = vpow2.f32 %v1050_v9 }
0x15e6   :  { %v1244_v17 = vpop.eup %1243 }
0x15e7   :  { %v1020_v19 = vadd.f32 1.0, %v1244_v17 }
0x15e9   :  { %1245 = vrcp.f32 %v1020_v19 }
0x15f6   :  { %v1246_v20 = vpop.eup %1245 }
0x15f7   :  { %1024 = vst.msk [vmem:[%s1497_s7 - $0x6] sm:$0xc0] %vm1023_vm4, %v1246_v20 }

</bundles_post_ra>
